<compile_context>
chip_gen: v7x
topology: tpu7x:2x2x1
jax: 0.10.0
libtpu: 0.0.40
codegen_flags: <defaults>
</compile_context>

<pallas_src>
import functools

import jax
import jax.numpy as jnp
from jax.experimental import pallas as pl
from jax.experimental.pallas import tpu as pltpu

LANES = 128
_TARGET_TILE_BYTES = 4 << 20        # v5e / v6e input tile target
_TARGET_TILE_BYTES_V7X = 8 << 20    # v7x input tile target (3.2 TB/s HBM per TC)
_MIN_TILE_BYTES = 1 << 20           # don't shrink below ~1 MiB just for >=4 steps
_MIN_TILE_BYTES_V7X = 512 << 10     # v7x: allow down to ~512 KiB to get 2 steps


def _parametric_sigmoid_kernel(params_ref, x_ref, o_ref, *, compute_dtype):
    """out = c_mul * tanh(x / 2) + c_add   (== (beta-alpha)*sigmoid(x)+alpha)."""
    # params_ref: (2,) f32 in SMEM holding [c_mul, c_add] -- scalar-slot reads.
    c_mul = params_ref[0].astype(compute_dtype)
    c_add = params_ref[1].astype(compute_dtype)
    x = x_ref[...].astype(compute_dtype)
    # Single EUP transcendental per element (tanh) + 3 cheap VPU ops.
    y = c_mul * jnp.tanh(x * 0.5) + c_add
    o_ref[...] = y.astype(o_ref.dtype)


def _device_kind() -> str:
    try:
        return jax.devices()[0].device_kind.lower()
    except Exception:  # pragma: no cover - e.g. no devices during AOT tracing
        return ""


def _sublane_multiple(dtype) -> int:
    # 8 for 32-bit, 16 for 16-bit, 32 for 8-bit dtypes (native packing).
    itemsize = jnp.dtype(dtype).itemsize
    return max(8, 32 // itemsize)


def _choose_block_rows(rows: int, sub: int, row_bytes: int, is_v7x: bool) -> int:
    """Pick the tile height (rows per grid step) for a (rows, 128) slab."""
    target_bytes = _TARGET_TILE_BYTES_V7X if is_v7x else _TARGET_TILE_BYTES
    rows_ceil = pl.cdiv(rows, sub) * sub

    target_rows = max(sub, (target_bytes // row_bytes) // sub * sub)
    block_rows = max(sub, min(target_rows, rows_ceil) // sub * sub)

    # Prefer >= 4 grid steps (deep pipeline; on v7x that's >= 2 per TC) as long
    # as tiles stay >= ~1 MiB.
    min_rows_1mib = max(sub, (_MIN_TILE_BYTES // row_bytes) // sub * sub)
    quarter = (rows_ceil // 4) // sub * sub
    if quarter >= min_rows_1mib:
        block_rows = min(block_rows, quarter)

    if is_v7x:
        # v7x has 2 TensorCores: force >= 2 grid steps (while tiles stay
        # >= ~512 KiB), and make the step count even so the 2-way shard of the
        # "parallel" grid axis is balanced.
        min_rows_512k = max(sub, (_MIN_TILE_BYTES_V7X // row_bytes) // sub * sub)
        half = (rows_ceil // 2) // sub * sub
        if half >= min_rows_512k:
            block_rows = min(block_rows, half)
        n_steps = pl.cdiv(rows, block_rows)
        if n_steps > 1 and n_steps % 2 == 1:
            n_steps += 1
            block_rows = max(sub, pl.cdiv(pl.cdiv(rows, n_steps), sub) * sub)

    # Clamp: either a multiple of `sub` (<= rows, ragged last block is fine) or
    # exactly the full dim (always a legal block shape).
    return min(block_rows, rows)


def parametric_sigmoid(x, alpha, beta):
    """Elementwise (beta - alpha) * sigmoid(x) + alpha via a Pallas TPU kernel."""
    orig_shape = x.shape
    orig_dtype = x.dtype
    total = int(x.size)
    if total == 0:
        return x

    # Fold into the single-transcendental tanh form: c_mul * tanh(x/2) + c_add.
    c_mul = 0.5 * (beta - alpha)
    c_add = alpha + c_mul
    params = jnp.stack(
        [jnp.asarray(c_mul, jnp.float32), jnp.asarray(c_add, jnp.float32)]
    )

    kind = _device_kind()
    is_v7x = "v7" in kind
    bf16_native = ("v6" in kind) or is_v7x
    compute_dtype = (
        jnp.bfloat16 if (orig_dtype == jnp.bfloat16 and bf16_native) else jnp.float32
    )

    itemsize = jnp.dtype(orig_dtype).itemsize
    sub = _sublane_multiple(orig_dtype)
    row_bytes = LANES * itemsize

    x_flat = x.reshape(-1)
    rows = total // LANES
    tail = total - rows * LANES

    kernel = functools.partial(_parametric_sigmoid_kernel, compute_dtype=compute_dtype)

    out_main = None
    if rows > 0:
        main = rows * LANES
        # Lane-aligned case (tail == 0): zero-copy reshape, no padding even when
        # `rows` is not a multiple of the sublane packing (ragged last grid
        # block is handled by Pallas).
        x2d = (x_flat if tail == 0 else x_flat[:main]).reshape(rows, LANES)
        block_rows = _choose_block_rows(rows, sub, row_bytes, is_v7x)
        grid = (pl.cdiv(rows, block_rows),)
        out2d = pl.pallas_call(
            kernel,
            out_shape=jax.ShapeDtypeStruct((rows, LANES), orig_dtype),
            grid=grid,
            in_specs=[
                pl.BlockSpec(memory_space=pltpu.MemorySpace.SMEM),   # (2,) params
                pl.BlockSpec((block_rows, LANES), lambda i: (i, 0)),
            ],
            out_specs=pl.BlockSpec((block_rows, LANES), lambda i: (i, 0)),
            compiler_params=pltpu.CompilerParams(
                dimension_semantics=("parallel",),
                vmem_limit_bytes=48 << 20,
            ),
        )(params, x2d)
        out_main = out2d.reshape(-1)

    if tail == 0:
        return out_main.reshape(orig_shape)

    # Ragged lane tail (< 128 elements): compute it with plain jnp instead of
    # padding/slicing the whole array (avoids a full extra HBM read+write of
    # the input on ragged shapes).
    # TODO(synk): a fully copy-free ragged path (no prefix slice / concat)
    # needs an in-kernel masked store from a flat pl.ANY ref; not worth it for
    # a < 128-element tail.
    x_tail = x_flat[rows * LANES:]
    y_tail = (
        params[0] * jnp.tanh(0.5 * x_tail.astype(jnp.float32)) + params[1]
    ).astype(orig_dtype)
    if out_main is None:
        return y_tail.reshape(orig_shape)
    return jnp.concatenate([out_main, y_tail]).reshape(orig_shape)


if __name__ == "__main__":
    key = jax.random.PRNGKey(0)
    alpha, beta = 0.1, 0.9  # deterministic "parameters" from __init__

    def ref(x):
        y = (beta - alpha) * jax.nn.sigmoid(x.astype(jnp.float32)) + alpha
        return y.astype(x.dtype)

    # 1) NCHW conv-style activation map (f32, lane-aligned -> zero-copy path).
    x1 = jax.random.normal(key, (2, 4, 16, 16), dtype=jnp.float32)
    y1 = jax.block_until_ready(parametric_sigmoid(x1, alpha, beta))
    assert y1.shape == x1.shape and y1.dtype == x1.dtype
    assert jnp.allclose(y1, ref(x1), atol=1e-5, rtol=1e-5), "mismatch (aligned f32)"

    # 2) Ragged size (exercises the prefix-kernel + jnp-tail path).
    k2 = jax.random.fold_in(key, 1)
    x2 = jax.random.normal(k2, (3, 5, 7, 11), dtype=jnp.float32)
    y2 = jax.block_until_ready(parametric_sigmoid(x2, alpha, beta))
    assert y2.shape == x2.shape and y2.dtype == x2.dtype
    assert jnp.allclose(y2, ref(x2), atol=1e-5, rtol=1e-5), "mismatch (ragged f32)"

    # 3) bf16 input (exercises bf16 compute on v6e/v7x, f32 fallback on v5e).
    k3 = jax.random.fold_in(key, 2)
    x3 = jax.random.normal(k3, (2, 4, 16, 16), dtype=jnp.bfloat16)
    y3 = jax.block_until_ready(parametric_sigmoid(x3, alpha, beta))
    assert y3.shape == x3.shape and y3.dtype == x3.dtype
    assert jnp.allclose(
        y3.astype(jnp.float32), ref(x3).astype(jnp.float32), atol=2e-2, rtol=2e-2
    ), "mismatch (bf16)"

    print("KERNEL_OK")
</pallas_src>

<mosaic_0001>
module attributes {stable_mosaic.version = 11 : i64} {
  func.func @_parametric_sigmoid_kernel(%arg0: i32, %arg1: memref<2xf32, #tpu.memory_space<smem>>, %arg2: memref<16x128xf32, #tpu.memory_space<vmem>>, %arg3: memref<16x128xf32, #tpu.memory_space<vmem>>) attributes {dimension_semantics = [#tpu.dimension_semantics<parallel>], iteration_bounds = array<i64: 1>, scalar_prefetch = 0 : i64, scratch_operands = 0 : i64, tpu.core_type = #tpu.core_type<tc>, window_params = [{transform_indices = @transform_0, window_bounds = array<i64: 2>}, {transform_indices = @transform_1, window_bounds = array<i64: 16, 128>}, {transform_indices = @transform_2, window_bounds = array<i64: 16, 128>}]} {
    %c0 = arith.constant 0 : index
    %0 = memref.load %arg1[%c0] : memref<2xf32, #tpu.memory_space<smem>>
    %c1 = arith.constant 1 : index
    %1 = memref.load %arg1[%c1] : memref<2xf32, #tpu.memory_space<smem>>
    %c0_0 = arith.constant 0 : index
    %c0_1 = arith.constant 0 : index
    %2 = vector.load %arg2[%c0_0, %c0_1] : memref<16x128xf32, #tpu.memory_space<vmem>>, vector<16x128xf32>
    %cst = arith.constant 5.000000e-01 : f32
    %3 = vector.broadcast %cst : f32 to vector<16x128xf32>
    %4 = arith.mulf %2, %3 : vector<16x128xf32>
    %5 = math.tanh %4 : vector<16x128xf32>
    %6 = vector.broadcast %0 : f32 to vector<16x128xf32>
    %7 = arith.mulf %6, %5 : vector<16x128xf32>
    %8 = vector.broadcast %1 : f32 to vector<16x128xf32>
    %9 = arith.addf %7, %8 : vector<16x128xf32>
    %c0_2 = arith.constant 0 : index
    %c0_3 = arith.constant 0 : index
    %10 = vector.load %arg3[%c0_2, %c0_3] : memref<16x128xf32, #tpu.memory_space<vmem>>, vector<16x128xf32>
    tpu.vector_store %arg3[%c0_2, %c0_3], %9 {strides = array<i32>} : memref<16x128xf32, #tpu.memory_space<vmem>>, vector<16x128xf32>,
    return
  }
  func.func @transform_0(%arg0: i32) -> i32 {
    %c0_i32 = arith.constant 0 : i32
    %c0_i32_0 = arith.constant 0 : i32
    return %c0_i32 : i32
  }
  func.func @transform_1(%arg0: i32) -> (i32, i32) {
    %c0_i32 = arith.constant 0 : i32
    %c0_i32_0 = arith.constant 0 : i32
    return %arg0, %c0_i32 : i32, i32
  }
  func.func @transform_2(%arg0: i32) -> (i32, i32) {
    %c0_i32 = arith.constant 0 : i32
    %c0_i32_0 = arith.constant 0 : i32
    return %arg0, %c0_i32 : i32, i32
  }
}

</mosaic_0001>

<bundles_post_ra>
// kernel: tpu_custom_call.1
= control target key start
LH: loop header
LB: loop body
LE: loop exit
PB: predicated region body
PF: predicated region fallthrough
CT: control target
= control target key end

     0   :  { %7 = vsyncpa [#allocation5], 0  ;;  %s203_s0 = inlined_call_operand.hbm [shape: f32[2], index: 0, kind: input, shape index: {}]   ;;  %s204_s1 = inlined_call_operand.hbm [shape: f32[16,128], index: 1, kind: input, shape index: {}]   ;;  %s205_s2 = inlined_call_operand.hbm [shape: f32[16,128], index: 2, kind: output, shape index: {}]  }
   0x1   :  { %8 = vsyncpa [#allocation3], 0 }
   0x2   :  { %9 = vsyncpa [#allocation4], 0  ;;  %s81_s11 = scalar_lea.hbm %s203_s0, 16 }
   0x3   :  { %p82_p0 = scmp.ne.s32.totalorder %s203_s0, %s81_s11  ;;  %p85_p1 = scmp.lt.u32.totalorder %s81_s11, %s203_s0 }
   0x5   :  { %p87_p2 = pnand %p85_p1, %p82_p0 }
   0x7   :  { %90 = shalt.err (!%p87_p2)
}
   0x8   :  { %s141_s16 = smov [#allocation2]   ;;  %s142_s19 = smov [#allocation6]  }
   0x9   :  { %17 = dma.hbm_to_smem %s203_s0, 16, %s141_s16, [#allocation5]  }
   0xa   :  { %s23_s20 = sshll.u32 %s142_s19, 4  ;;  %s91_s23 = scalar_lea.hbm %s204_s1, 256  ;;  %s24_s20 = int_to_ptr.vmem [resolvable:$true] %s23_s20 }
   0xb   :  { %p92_p3 = scmp.ne.s32.totalorder %s204_s1, %s91_s23  ;;  %p95_p4 = scmp.lt.u32.totalorder %s91_s23, %s204_s1 }
   0xd   :  { %p97_p5 = pnand %p95_p4, %p92_p3 }
   0xf   :  { %100 = shalt.err (!%p97_p5)
}
  0x10   :  { %s101_s28 = scalar_lea.vmem %s24_s20, 256  ;;  %p106_p7 = scmp.lt.s32.totalorder %s24_s20, %s24_s20 }
  0x11   :  { %p102_p6 = scmp.ne.s32.totalorder %s24_s20, %s101_s28  ;;  %p107_p8 = scmp.lt.s32.totalorder %s101_s28, %s101_s28 }
  0x13   :  { %p108_p9 = por %p107_p8, %p106_p7 }
  0x15   :  { %p109_p10 = pnand %p108_p9, %p102_p6 }
  0x17   :  { %112 = shalt.err (!%p109_p10)
}
  0x18   :  { %s143_s0 = smov 128   ;;  %s144_s29 = smov 8  }
  0x19   :  { %29 = dma.hbm_to_vmem [thread:$0]  %s204_s1, 256, %s24_s20, [#allocation3], %s143_s0, %s143_s0, %s144_s29  }
  0x1a   :  { %135 = dma.done.wait [#allocation5], 16  }
  0x1b   :  { %136 = vsyncadd [#allocation5], 4294967280 }
  0x1c   :  { %137 = dma.done.wait [#allocation3], 256  }
  0x1d   :  { %138 = vsyncadd [#allocation3], 4294967040 }
  0x1e   :  { %36 = sfence }
  0x1f   :  { %v39_v0 = vld [vmem:[#allocation6] sm:$0xff]  ;;  %v40_v1 = vld [vmem:[#allocation6 + $0x8] sm:$0xff]  ;;  %s37_s4 = sld [smem:[#allocation2]]  ;;  %s71_s5 = sld [smem:[#allocation2 + $0x1]] }
  0x20   :  { %v41_v2 = vmul.f32 0.5, %v39_v0  ;;  %v42_v3 = vmul.f32 0.5, %v40_v1  ;;  %s145_s6 = smov [#allocation7]  }
  0x21   :  { %s58_s1 = sshll.u32 %s145_s6, 4  ;;  %s59_s1 = int_to_ptr.vmem [resolvable:$true] %s58_s1 }
  0x22   :  { %77 = vtanh.f32 %v41_v2  ;;  %s113_s7 = scalar_lea.vmem %s59_s1, 256  ;;  %p118_p12 = scmp.lt.s32.totalorder %s59_s1, %s59_s1 }
  0x23   :  { %79 = vtanh.f32 %v42_v3  ;;  %p114_p11 = scmp.ne.s32.totalorder %s59_s1, %s113_s7  ;;  %p119_p13 = scmp.lt.s32.totalorder %s113_s7, %s113_s7 }
  0x25   :  { %v45_v4 = vstv %s37_s4  ;;  %v48_v6 = vstv %s71_s5  ;;  %p120_p0 = por %p119_p13, %p118_p12 }
  0x27   :  { %p121_p1 = pnand %p120_p0, %p114_p11 }
  0x2c   :  { %v78_v5 = vpop.eup %77 }
  0x2d   :  { %v80_v7 = vpop.eup %79  ;;  %v46_v8 = vmul.f32 %v78_v5, %v45_v4 }
  0x2e   :  { %v47_v9 = vmul.f32 %v80_v7, %v45_v4 }
  0x2f   :  { %v49_v10 = vadd.f32 %v48_v6, %v46_v8 }
  0x30   :  { %v50_v11 = vadd.f32 %v48_v6, %v47_v9 }
  0x31   :  { %51 = vst [vmem:[#allocation7] sm:$0xff] %v49_v10 }
  0x32   :  { %52 = vst [vmem:[#allocation7 + $0x8] sm:$0xff] %v50_v11 }
  0x33   :  { %124 = shalt.err (!%p121_p1)
}
  0x34   :  { %s125_s10 = scalar_lea.hbm %s205_s2, 256 }
  0x35   :  { %p126_p2 = scmp.ne.s32.totalorder %s205_s2, %s125_s10  ;;  %p129_p3 = scmp.lt.u32.totalorder %s125_s10, %s205_s2 }
  0x37   :  { %p131_p4 = pnand %p129_p3, %p126_p2 }
  0x39   :  { %134 = shalt.err (!%p131_p4)
}
  0x3a   :  { %64 = dma.vmem_to_hbm [thread:$0]  %s59_s1, 256, %s205_s2, [#allocation4], %s143_s0, %s143_s0, %s144_s29  }
  0x3b   :  { %139 = dma.done.wait [#allocation4], 256  }
  0x3c   :  { %140 = vsyncadd [#allocation4], 4294967040 }
  0x3d   :  { %68 = vsyncpa [#allocation3], 1 }
  0x3e   :  { %69 = vsyncpa [#allocation4], 1 }
  0x3f   :  { %70 = vsyncpa [#allocation5], 1 }

</bundles_post_ra>
